<compile_context>
chip_gen: v7x
topology: tpu7x:2x2x1
jax: 0.10.0
libtpu: 0.0.40
codegen_flags: <defaults>
</compile_context>

<pallas_src>
import functools
import math

import jax
import jax.numpy as jnp
from jax.experimental import pallas as pl
from jax.experimental.pallas import tpu as pltpu


def _round_up(x, m):
    return ((x + m - 1) // m) * m


# ------------------------------------------------------------ fused matmul --
def _mm_kernel(a_ref, b_ref, scale_ref, shift_ref, o_ref, acc_ref, *, relu):
    @pl.when(pl.program_id(2) == 0)
    def _():
        acc_ref[...] = jnp.zeros_like(acc_ref)

    acc_ref[...] += jnp.dot(a_ref[...], b_ref[...],
                            preferred_element_type=jnp.float32)

    @pl.when(pl.program_id(2) == pl.num_programs(2) - 1)
    def _():
        y = acc_ref[...] * scale_ref[...] + shift_ref[...]
        if relu:
            y = jnp.maximum(y, 0.0)
        o_ref[...] = y.astype(o_ref.dtype)


def _mm_res_kernel(a_ref, b_ref, scale_ref, shift_ref, res_ref, o_ref, acc_ref,
                   *, relu):
    @pl.when(pl.program_id(2) == 0)
    def _():
        acc_ref[...] = jnp.zeros_like(acc_ref)

    acc_ref[...] += jnp.dot(a_ref[...], b_ref[...],
                            preferred_element_type=jnp.float32)

    @pl.when(pl.program_id(2) == pl.num_programs(2) - 1)
    def _():
        y = acc_ref[...] * scale_ref[...] + shift_ref[...] + res_ref[...]
        if relu:
            y = jnp.maximum(y, 0.0)
        o_ref[...] = y.astype(o_ref.dtype)


_K_STEP_MAX = 1152   # largest single-step K tile (keeps double-buffered VMEM < ~4 MiB)


def fused_matmul(a, b, scale, shift, *, residual=None, relu=False):
    """(M,K) @ (K,N) * scale + shift (+ residual) (+ ReLU).

    a/b are cast to bf16 for the MXU; accumulation and output are f32.
    scale/shift: (N,). residual: optional (M, N) f32.
    """
    M, K = a.shape
    K2, N = b.shape
    assert K == K2

    # ---- tile selection (avoid padding when shapes are already aligned) ----
    tm = min(_round_up(M, 8), 256)
    Mp = _round_up(M, tm)
    if N <= 256:
        tn, Np = N, N                      # full-extent (allowed even if <128 lanes)
    else:
        tn = 256
        Np = _round_up(N, tn)
    Kp0 = _round_up(K, 128)
    if Kp0 <= _K_STEP_MAX:
        tk, Kp = Kp0, Kp0                  # single K step
    else:
        nk = -(-Kp0 // _K_STEP_MAX)
        tk = _round_up(-(-Kp0 // nk), 128)
        Kp = nk * tk

    a = a.astype(jnp.bfloat16)
    b = b.astype(jnp.bfloat16)
    if (Mp, Kp) != (M, K):
        a = jnp.pad(a, ((0, Mp - M), (0, Kp - K)))
    if (Kp, Np) != (K, N):
        b = jnp.pad(b, ((0, Kp - K), (0, Np - N)))

    scale2 = scale.reshape(1, N).astype(jnp.float32)
    shift2 = shift.reshape(1, N).astype(jnp.float32)
    if Np != N:
        scale2 = jnp.pad(scale2, ((0, 0), (0, Np - N)))
        shift2 = jnp.pad(shift2, ((0, 0), (0, Np - N)))

    in_specs = [pl.BlockSpec((tm, tk), lambda i, j, k: (i, k)),
                pl.BlockSpec((tk, tn), lambda i, j, k: (k, j)),
                pl.BlockSpec((1, tn), lambda i, j, k: (0, j)),
                pl.BlockSpec((1, tn), lambda i, j, k: (0, j))]
    operands = [a, b, scale2, shift2]
    if residual is not None:
        res = residual.astype(jnp.float32)
        if (Mp, Np) != (M, N):
            res = jnp.pad(res, ((0, Mp - M), (0, Np - N)))
        in_specs.append(pl.BlockSpec((tm, tn), lambda i, j, k: (i, j)))
        operands.append(res)
        kernel = functools.partial(_mm_res_kernel, relu=relu)
    else:
        kernel = functools.partial(_mm_kernel, relu=relu)

    out = pl.pallas_call(
        kernel,
        out_shape=jax.ShapeDtypeStruct((Mp, Np), jnp.float32),
        grid_spec=pltpu.PrefetchScalarGridSpec(
            num_scalar_prefetch=0,
            grid=(Mp // tm, Np // tn, Kp // tk),
            in_specs=in_specs,
            out_specs=pl.BlockSpec((tm, tn), lambda i, j, k: (i, j)),
            scratch_shapes=[pltpu.VMEM((tm, tn), jnp.float32)]),
        compiler_params=pltpu.CompilerParams(
            dimension_semantics=("parallel", "parallel", "arbitrary"),
            vmem_limit_bytes=32 * 1024 * 1024),
    )(*operands)
    if (Mp, Np) != (M, N):
        out = out[:M, :N]
    return out


# ----------------------------------------------------------------- pooling --
def _maxtap_kernel(*refs):
    o_ref = refs[-1]
    m = refs[0][...]
    for r in refs[1:-1]:
        m = jnp.maximum(m, r[...])
    o_ref[...] = m


def maxpool_3x3_s2(x):
    """nn.MaxPool2d(kernel_size=3, stride=2, padding=1) on NHWC input (tiled, 9 taps)."""
    B, H, W, C = x.shape
    k, s, pad = 3, 2, 1
    Ho = (H + 2 * pad - k) // s + 1
    Wo = (W + 2 * pad - k) // s + 1
    xp = jnp.pad(x, ((0, 0), (pad, pad), (pad, pad), (0, 0)),
                 constant_values=-jnp.inf)
    R = B * Ho * Wo
    taps = [xp[:, i:i + s * Ho:s, j:j + s * Wo:s, :].reshape(R, C)
            for i in range(k) for j in range(k)]

    # lane-dense packing: (R, 64) -> (R/2, 128) so stores are not lane-masked
    packed = (C % 128 != 0) and ((2 * C) % 128 == 0) and (R % 2 == 0)
    if packed:
        taps = [t.reshape(R // 2, 2 * C) for t in taps]
    Rr, Cc = taps[0].shape

    tr = min(_round_up(Rr, 8), 512)
    Rp = _round_up(Rr, tr)
    if Rp != Rr:
        taps = [jnp.pad(t, ((0, Rp - Rr), (0, 0))) for t in taps]

    out = pl.pallas_call(
        _maxtap_kernel,
        out_shape=jax.ShapeDtypeStruct((Rp, Cc), jnp.float32),
        grid_spec=pltpu.PrefetchScalarGridSpec(
            num_scalar_prefetch=0,
            grid=(Rp // tr,),
            in_specs=[pl.BlockSpec((tr, Cc), lambda i: (i, 0))
                      for _ in range(k * k)],
            out_specs=pl.BlockSpec((tr, Cc), lambda i: (i, 0))),
        compiler_params=pltpu.CompilerParams(
            dimension_semantics=("parallel",)),
    )(*taps)
    out = out[:Rr]
    if packed:
        out = out.reshape(R, C)
    return out.reshape(B, Ho, Wo, C)


def _avgpool_kernel(x_ref, o_ref):
    o_ref[...] = jnp.mean(x_ref[...], axis=1)


def global_avgpool(x):
    """nn.AdaptiveAvgPool2d((1,1)) + flatten -> (B, C), tiled over batch."""
    B, H, W, C = x.shape
    xr = x.reshape(B, H * W, C)
    return pl.pallas_call(
        _avgpool_kernel,
        out_shape=jax.ShapeDtypeStruct((B, C), jnp.float32),
        grid_spec=pltpu.PrefetchScalarGridSpec(
            num_scalar_prefetch=0,
            grid=(B,),
            in_specs=[pl.BlockSpec((1, H * W, C), lambda b: (b, 0, 0))],
            out_specs=pl.BlockSpec((1, C), lambda b: (b, 0))),
        compiler_params=pltpu.CompilerParams(
            dimension_semantics=("parallel",)),
    )(xr)


# ------------------------------------------------------------- convolution --
def _im2col(x, kh, kw, stride, pad):
    B, H, W, C = x.shape
    Ho = (H + 2 * pad - kh) // stride + 1
    Wo = (W + 2 * pad - kw) // stride + 1
    xp = jnp.pad(x, ((0, 0), (pad, pad), (pad, pad), (0, 0)))
    patches = [xp[:, i:i + stride * Ho:stride, j:j + stride * Wo:stride, :]
               for i in range(kh) for j in range(kw)]
    cols = jnp.stack(patches, axis=3).reshape(B * Ho * Wo, kh * kw * C)
    return cols, B, Ho, Wo


def conv2d_bn(x, w, bn, *, stride=1, pad=0, relu=True, residual=None, eps=1e-5):
    """Conv (PyTorch-layout weight (O,I,kh,kw), no bias) + fused BN (+residual) (+ReLU)."""
    O, I, kh, kw = w.shape
    gamma, beta, mean, var = bn
    inv = gamma / jnp.sqrt(var + eps)
    scale = inv
    shift = beta - mean * inv

    xb = x.astype(jnp.bfloat16)
    if kh == 1 and kw == 1 and pad == 0:
        # 1x1 conv: no im2col, just (strided) reshape
        xs = xb[:, ::stride, ::stride, :] if stride > 1 else xb
        B, Ho, Wo, C = xs.shape
        cols = xs.reshape(B * Ho * Wo, C)
    else:
        cols, B, Ho, Wo = _im2col(xb, kh, kw, stride, pad)

    w2 = jnp.transpose(w, (2, 3, 1, 0)).reshape(kh * kw * I, O).astype(jnp.bfloat16)
    res2 = None if residual is None else residual.reshape(B * Ho * Wo, O)
    y = fused_matmul(cols, w2, scale, shift, residual=res2, relu=relu)
    return y.reshape(B, Ho, Wo, O)


# --------------------------------------------------------- ResNet-50 model --
def bottleneck(x, p):
    out = conv2d_bn(x, p["conv1"], p["bn1"], relu=True)
    out = conv2d_bn(out, p["conv2"], p["bn2"], stride=p["stride"], pad=1, relu=True)
    if "down_conv" in p:
        identity = conv2d_bn(x, p["down_conv"], p["down_bn"],
                             stride=p["stride"], relu=False)
    else:
        identity = x
    # conv3 + BN3 + residual add + ReLU fused into one matmul epilogue
    return conv2d_bn(out, p["conv3"], p["bn3"], relu=True, residual=identity)


def encoder_cnn_forward(images_nchw, params):
    x = jnp.transpose(images_nchw, (0, 2, 3, 1)).astype(jnp.float32)   # NCHW -> NHWC
    x = conv2d_bn(x, params["conv1"], params["bn1"], stride=2, pad=3, relu=True)  # stem 7x7/2 + BN + ReLU
    x = maxpool_3x3_s2(x)
    for layer in ("layer1", "layer2", "layer3", "layer4"):
        for blk in params[layer]:
            x = bottleneck(x, blk)
    feats = global_avgpool(x)                               # == features.view(B, -1), (B, 2048)
    w, b = params["embed"]
    feats = fused_matmul(feats, jnp.transpose(w), jnp.ones_like(b), b, relu=False)  # Linear
    return feats


# ----------------------------------------------------- deterministic params --
class KeyGen:
    def __init__(self, key):
        self._key = key

    def __call__(self):
        self._key, k = jax.random.split(self._key)
        return k


def _conv_w(kg, o, i, kh, kw):
    std = math.sqrt(2.0 / (i * kh * kw))                    # He init (synthetic weights)
    return std * jax.random.normal(kg(), (o, i, kh, kw), jnp.float32)


def _bn_params(kg, c):
    gamma = 1.0 + 0.02 * jax.random.normal(kg(), (c,), jnp.float32)
    beta = 0.02 * jax.random.normal(kg(), (c,), jnp.float32)
    mean = 0.01 * jax.random.normal(kg(), (c,), jnp.float32)
    var = jnp.ones((c,), jnp.float32)
    return (gamma, beta, mean, var)


def make_params(kg, embed_size):
    params = {"conv1": _conv_w(kg, 64, 3, 7, 7), "bn1": _bn_params(kg, 64)}
    inplanes = 64
    cfgs = [("layer1", 64, 3, 1), ("layer2", 128, 4, 2),
            ("layer3", 256, 6, 2), ("layer4", 512, 3, 2)]
    for name, planes, blocks, stride in cfgs:
        blks = []
        for b in range(blocks):
            s = stride if b == 0 else 1
            p = {"stride": s,
                 "conv1": _conv_w(kg, planes, inplanes, 1, 1),
                 "bn1": _bn_params(kg, planes),
                 "conv2": _conv_w(kg, planes, planes, 3, 3),
                 "bn2": _bn_params(kg, planes),
                 "conv3": _conv_w(kg, planes * 4, planes, 1, 1),
                 "bn3": _bn_params(kg, planes * 4)}
            if s != 1 or inplanes != planes * 4:
                p["down_conv"] = _conv_w(kg, planes * 4, inplanes, 1, 1)
                p["down_bn"] = _bn_params(kg, planes * 4)
            inplanes = planes * 4
            blks.append(p)
        params[name] = blks
    in_features = 2048                                      # resnet.fc.in_features
    bound = 1.0 / math.sqrt(in_features)
    w = jax.random.uniform(kg(), (embed_size, in_features), jnp.float32, -bound, bound)
    b = jax.random.uniform(kg(), (embed_size,), jnp.float32, -bound, bound)
    params["embed"] = (w, b)
    return params


if __name__ == "__main__":
    key = jax.random.PRNGKey(0)
    k_img, k_par = jax.random.split(key)
    embed_size = 32
    images = jax.random.normal(k_img, (2, 3, 64, 64), jnp.float32)   # NCHW, batch=2
    params = make_params(KeyGen(k_par), embed_size)

    feats = encoder_cnn_forward(images, params)
    feats = jax.block_until_ready(feats)

    assert feats.shape == (2, embed_size), feats.shape
    assert feats.dtype == jnp.float32
    assert bool(jnp.all(jnp.isfinite(feats)))
    print("KERNEL_OK")
</pallas_src>

<mosaic_0001>
module attributes {stable_mosaic.version = 11 : i64} {
  func.func @_mm_kernel(%arg0: i32, %arg1: i32, %arg2: i32, %arg3: memref<256x256xbf16, #tpu.memory_space<vmem>>, %arg4: memref<256x64xbf16, #tpu.memory_space<vmem>>, %arg5: memref<1x64xf32, #tpu.memory_space<vmem>>, %arg6: memref<1x64xf32, #tpu.memory_space<vmem>>, %arg7: memref<256x64xf32, #tpu.memory_space<vmem>>, %arg8: memref<256x64xf32, #tpu.memory_space<vmem>>) attributes {dimension_semantics = [#tpu.dimension_semantics<parallel>, #tpu.dimension_semantics<parallel>, #tpu.dimension_semantics<arbitrary>], iteration_bounds = array<i64: 8, 1, 1>, scalar_prefetch = 0 : i64, scratch_operands = 1 : i64, tpu.core_type = #tpu.core_type<tc>, window_params = [{transform_indices = @transform_0, window_bounds = array<i64: 256, 256>}, {transform_indices = @transform_1, window_bounds = array<i64: 256, 64>}, {transform_indices = @transform_2, window_bounds = array<i64: 1, 64>}, {transform_indices = @transform_3, window_bounds = array<i64: 1, 64>}, {transform_indices = @transform_4, window_bounds = array<i64: 256, 64>}]} {
    %c0_i32 = arith.constant 0 : i32
    %0 = arith.cmpi eq, %arg2, %c0_i32 : i32
    %1 = arith.extui %0 : i1 to i32
    %c0_i32_0 = arith.constant 0 : i32
    %2 = arith.cmpi ne, %1, %c0_i32_0 : i32
    scf.if %2 {
      %cst_10 = arith.constant 0.000000e+00 : f32
      %12 = vector.broadcast %cst_10 : f32 to vector<256x64xf32>
      %c0_11 = arith.constant 0 : index
      %c0_12 = arith.constant 0 : index
      %13 = vector.load %arg8[%c0_11, %c0_12] : memref<256x64xf32, #tpu.memory_space<vmem>>, vector<256x64xf32>
      tpu.vector_store %arg8[%c0_11, %c0_12], %12 {strides = array<i32>} : memref<256x64xf32, #tpu.memory_space<vmem>>, vector<256x64xf32>,
    } else {
    }
    %c0 = arith.constant 0 : index
    %c0_1 = arith.constant 0 : index
    %3 = vector.load %arg8[%c0, %c0_1] : memref<256x64xf32, #tpu.memory_space<vmem>>, vector<256x64xf32>
    %c0_2 = arith.constant 0 : index
    %c0_3 = arith.constant 0 : index
    %4 = vector.load %arg3[%c0_2, %c0_3] : memref<256x256xbf16, #tpu.memory_space<vmem>>, vector<256x256xbf16>
    %c0_4 = arith.constant 0 : index
    %c0_5 = arith.constant 0 : index
    %5 = vector.load %arg4[%c0_4, %c0_5] : memref<256x64xbf16, #tpu.memory_space<vmem>>, vector<256x64xbf16>
    %cst = arith.constant dense<0.000000e+00> : vector<256x64xf32>
    %6 = tpu.matmul %4, %5, %cst {dimension_numbers = #tpu.dot_dimension_numbers<[1], [0], [0], [1], [0, 0, 1, 1], [], []>} : vector<256x256xbf16>, vector<256x64xbf16>, vector<256x64xf32> -> vector<256x64xf32>
    %7 = arith.addf %3, %6 : vector<256x64xf32>
    %c0_6 = arith.constant 0 : index
    %c0_7 = arith.constant 0 : index
    %8 = vector.load %arg8[%c0_6, %c0_7] : memref<256x64xf32, #tpu.memory_space<vmem>>, vector<256x64xf32>
    tpu.vector_store %arg8[%c0_6, %c0_7], %7 {strides = array<i32>} : memref<256x64xf32, #tpu.memory_space<vmem>>, vector<256x64xf32>,
    %c0_i32_8 = arith.constant 0 : i32
    %9 = arith.cmpi eq, %arg2, %c0_i32_8 : i32
    %10 = arith.extui %9 : i1 to i32
    %c0_i32_9 = arith.constant 0 : i32
    %11 = arith.cmpi ne, %10, %c0_i32_9 : i32
    scf.if %11 {
      %c0_10 = arith.constant 0 : index
      %c0_11 = arith.constant 0 : index
      %12 = vector.load %arg8[%c0_10, %c0_11] : memref<256x64xf32, #tpu.memory_space<vmem>>, vector<256x64xf32>
      %c0_12 = arith.constant 0 : index
      %c0_13 = arith.constant 0 : index
      %13 = vector.load %arg5[%c0_12, %c0_13] : memref<1x64xf32, #tpu.memory_space<vmem>>, vector<1x64xf32>
      %14 = vector.broadcast %13 : vector<1x64xf32> to vector<256x64xf32>
      %15 = arith.mulf %12, %14 : vector<256x64xf32>
      %c0_14 = arith.constant 0 : index
      %c0_15 = arith.constant 0 : index
      %16 = vector.load %arg6[%c0_14, %c0_15] : memref<1x64xf32, #tpu.memory_space<vmem>>, vector<1x64xf32>
      %17 = vector.broadcast %16 : vector<1x64xf32> to vector<256x64xf32>
      %18 = arith.addf %15, %17 : vector<256x64xf32>
      %cst_16 = arith.constant 0.000000e+00 : f32
      %19 = vector.broadcast %cst_16 : f32 to vector<256x64xf32>
      %20 = arith.maximumf %18, %19 : vector<256x64xf32>
      %c0_17 = arith.constant 0 : index
      %c0_18 = arith.constant 0 : index
      %21 = vector.load %arg7[%c0_17, %c0_18] : memref<256x64xf32, #tpu.memory_space<vmem>>, vector<256x64xf32>
      tpu.vector_store %arg7[%c0_17, %c0_18], %20 {strides = array<i32>} : memref<256x64xf32, #tpu.memory_space<vmem>>, vector<256x64xf32>,
    } else {
    }
    return
  }
  func.func @transform_0(%arg0: i32, %arg1: i32, %arg2: i32) -> (i32, i32) {
    %c0_i32 = arith.constant 0 : i32
    return %arg0, %arg2 : i32, i32
  }
  func.func @transform_1(%arg0: i32, %arg1: i32, %arg2: i32) -> (i32, i32) {
    %c0_i32 = arith.constant 0 : i32
    return %arg2, %arg1 : i32, i32
  }
  func.func @transform_2(%arg0: i32, %arg1: i32, %arg2: i32) -> (i32, i32) {
    %c0_i32 = arith.constant 0 : i32
    %c0_i32_0 = arith.constant 0 : i32
    return %c0_i32, %arg1 : i32, i32
  }
  func.func @transform_3(%arg0: i32, %arg1: i32, %arg2: i32) -> (i32, i32) {
    %c0_i32 = arith.constant 0 : i32
    %c0_i32_0 = arith.constant 0 : i32
    return %c0_i32, %arg1 : i32, i32
  }
  func.func @transform_4(%arg0: i32, %arg1: i32, %arg2: i32) -> (i32, i32) {
    %c0_i32 = arith.constant 0 : i32
    return %arg0, %arg1 : i32, i32
  }
}

</mosaic_0001>

<bundles_post_ra>
// kernel: tpu_custom_call.1
= control target key start
LH: loop header
LB: loop body
LE: loop exit
PB: predicated region body
PF: predicated region fallthrough
CT: control target
= control target key end

     0   :  { %9 = vsyncpa [#allocation4], 0  ;;  %s2083_s0 = inlined_call_operand.hbm [shape: bf16[2048,256], index: 0, kind: input, shape index: {}]   ;;  %s2084_s1 = inlined_call_operand.vmem [shape: bf16[256,64], index: 1, kind: input, shape index: {}]   ;;  %s2085_s2 = inlined_call_operand.vmem [shape: f32[1,64], index: 2, kind: input, shape index: {}]   ;;  %s2086_s3 = inlined_call_operand.vmem [shape: f32[1,64], index: 3, kind: input, shape index: {}]   ;;  %s2087_s4 = inlined_call_operand.vmem [shape: f32[2048,64], index: 4, kind: output, shape index: {}]  }
   0x1   :  { %11 = vsyncpa [#allocation4 + $0x1], 0  ;;  %s1671_s15 = smov 0   ;;  %s1673_s16 = smov 0  }
   0x2   :  { %s1675_s17 = smov 0   ;;  %s1677_s18 = smov 0  }
   0x3   :  { %s1679_s19 = smov 0   ;;  %s1681_s20 = smov 0  }
   0x4 LB: > { %s1241_s21 = sadd.s32 4294967295, %s1640_s20   ;;  %s36_s22 = sadd.s32 1, %s1636_s19  ;;  %s1640_s20 = sphi %s1681_s20, %s17_s20   ;;  %s1636_s19 = sphi %s1679_s19, %s2095_s19   ;;  %s1632_s18 = sphi %s1677_s18, %s2094_s18   ;;  %s1628_s17 = sphi %s1675_s17, %s2093_s17   ;;  %s1624_s16 = sphi %s1673_s16, %s2092_s16   ;;  %s1620_s15 = sphi %s1671_s15, %s2091_s15  }
   0x5   : > { %p38_p0 = scmp.ge.s32.totalorder %s36_s22, 8  ;;  %s45_s23 = sadd.s32 1, %s1628_s17 }
   0x6   : > { %p52_p1 = scmp.ne.s32.totalorder %s1628_s17, %s1624_s16  ;;  %p53_p2 = scmp.eq.s32.totalorder %s1640_s20, 0 }
   0x7   : > { %s2097_s22 = smov (%p38_p0, %s36_s22), 0  ;;  %p58_p4 = scmp.ne.s32.totalorder %s1624_s16, %s1620_s15 }
   0x8   : > { %p1707_p3 = por %p53_p2, %p52_p1  ;;  %s40_s25 = ssub.s32 %s1636_s19, %s2097_s22 }
   0x9   : > { %p59_p5 = scmp.eq.s32.totalorder %s1241_s21, 0  ;;  %p43_p6 = scmp.eq.s32.totalorder %s40_s25, 0 }
   0xa   : > { %p1444_p8 = scmp.lt.s32.totalorder %s1640_s20, 8  ;;  %s214_s28 = sand.u32 1, %s1628_s17  }
   0xb   : > { %p1714_p7 = por %p59_p5, %p58_p4  ;;  %s1309_s29 = sshll.u32 %s1636_s19, 12 }
   0xc   : > { %s1720_s27 = scalar_select %p43_p6, %s1628_s17, %s45_s23  }
   0xd   : > { %s1248_s30 = sshll.u32 %s214_s28, 8  ;;  %s1727_s7 = scalar_lea.hbm %s2083_s0, %s1309_s29 }
   0xe   : > { %s218_s8 = scalar_lea.vmem [#allocation3], %s1248_s30  ;;  %p1731_p9 = pnand %p1444_p8, %p1707_p3 }
   0xf   : > { %s228_s9 = sshll.u32 %s218_s8, 4  ;;  %s1737_s11 = scalar_lea.sflag [#allocation4], %s214_s28  ;;  %s1735_s9 = int_to_ptr.vmem [resolvable:$true] %s228_s9 }
  0x10   : > { %s1560_s12 = scalar_lea.hbm %s1727_s7, 4096  ;;  %p1562_p11 = pneg %p1731_p9 }
  0x11   : > { %p1561_p10 = scmp.ne.s32.totalorder %s1727_s7, %s1560_s12  ;;  %s1565_s15 = scalar_lea.hbm %s2083_s0, 32768 }
  0x12   : > { %p1566_p0 = scmp.lt.u32.totalorder %s1727_s7, %s2083_s0  ;;  %p1567_p1 = scmp.lt.u32.totalorder %s1565_s15, %s1560_s12 }
  0x13   : > { %p1563_p12 = pnand %p1562_p11, %p1561_p10  ;;  %p1569_p3 = scmp.lt.u32.totalorder %s1560_s12, %s1727_s7 }
  0x14   : > { %p1568_p2 = por %p1567_p1, %p1566_p0 }
  0x15   : > { %p1564_p13 = pneg %p1563_p12 }
  0x16   : > { %p1570_p4 = por %p1569_p3, %p1568_p2 }
  0x18   : > { %p1571_p5 = pnand %p1570_p4, %p1564_p13 }
  0x1a   : > { %1574 = shalt.err (!%p1571_p5)
}
  0x1b   : > { %s1575_s24 = scalar_lea.vmem %s1735_s9, 4096  ;;  %s1642_s25 = smov [#allocation3]  }
  0x1c   : > { %p1576_p6 = scmp.ne.s32.totalorder %s1735_s9, %s1575_s24  ;;  %s1580_s28 = sshll.u32 %s1642_s25, 4  ;;  %s1581_s28 = int_to_ptr.vmem [resolvable:$false] %s1580_s28 }
  0x1d   : > { %s1582_s29 = scalar_lea.vmem %s1581_s28, 8192  ;;  %p1583_p12 = scmp.lt.s32.totalorder %s1735_s9, %s1581_s28 }
  0x1e   : > { %p1578_p8 = pnand %p1576_p6, %p1562_p11  ;;  %p1584_p0 = scmp.lt.s32.totalorder %s1582_s29, %s1575_s24 }
  0x20   : > { %p1579_p10 = pneg %p1578_p8  ;;  %p1585_p1 = por %p1584_p0, %p1583_p12 }
  0x22   : > { %p1586_p2 = pnand %p1585_p1, %p1579_p10 }
  0x24   : > { %1589 = shalt.err (!%p1586_p2)
}
  0x25   : > { %s1643_s30 = smov 128   ;;  %s1644_s5 = smov 8  }
  0x26   : > { %1443 = dma.hbm_to_vmem [thread:$0]  (!%p1731_p9), %s1727_s7, 4096, %s1735_s9, %s1737_s11, %s1643_s30, %s1643_s30, %s1644_s5  }
  0x27   : > { %p1252_p11 = scmp.ge.s32.totalorder %s1640_s20, 1  ;;  %p236_p13 = scmp.lt.s32.totalorder %s1640_s20, 9 }
  0x29   : > { %p237_p3 = pnand %p1252_p11, %p236_p13 }
  0x2a   : > { %s242_s6 = sand.u32 (!%p237_p3), 1, %s1624_s16  }
  0x2b   : > { %240 = sbr.rel (%p237_p3) target bundleno = 375 (0x177), region = 36  ;;  %s1253_s8 = sshll.u32 (!%p237_p3), %s242_s6, 8 }
  0x2c   : > { %s243_s12 = scalar_lea.sflag (!%p237_p3), [#allocation4], %s242_s6  ;;  %s1768_s13 = scalar_lea.vmem (!%p237_p3), [#allocation3], %s1253_s8 }
  0x32   : > { %1615 = dma.done.wait (%p1714_p7), %s243_s12, 4096  }
  0x33   : > { %1617 = vsyncadd (%p1714_p7), %s243_s12, 4294963200  ;;  %v1496_v0 = vld [vmem:[%s2084_s1 + $0x40] sm:$0xff]   ;;  %v1498_v2 = vld [vmem:[%s2084_s1 + $0x48] sm:$0xff]   ;;  %vm319_vm0 = vcmask 523264   ;;  %v1645_v48 = vmov 0.0  }
  0x34   : > { %v1497_v1 = vld [vmem:[%s2084_s1] sm:$0xff]   ;;  %1310 = vmatprep.subr.bf16.mxu0 %v1496_v0  ;;  %1422 = vmatprep.subr.bf16.mxu1 %v1496_v0  ;;  %v1499_v3 = vld [vmem:[%s2084_s1 + $0x8] sm:$0xff]   ;;  %v1500_v4 = vld [vmem:[%s2084_s1 + $0x50] sm:$0xff]   ;;  %320 = vst.msk [vmem:[#allocation2] sm:$0xff] %vm319_vm0, %v1645_v48 }
  0x35   : > { %1311 = vmatpush3.bf16.msra.mxu0 %v1497_v1  ;;  %1430 = vmatpush3.bf16.msra.mxu1 %v1497_v1  ;;  %v1501_v5 = vld [vmem:[%s2084_s1 + $0x10] sm:$0xff]   ;;  %v1502_v6 = vld [vmem:[%s2084_s1 + $0x58] sm:$0xff]   ;;  %v1504_v8 = vld [vmem:[%s2084_s1 + $0x60] sm:$0xff]   ;;  %321 = vst.msk [vmem:[#allocation2 + $0x8] sm:$0xff] %vm319_vm0, %v1645_v48 }
  0x36   : > { %1312 = vmatprep.subr.bf16.mxu0 %v1498_v2  ;;  %1423 = vmatprep.subr.bf16.mxu1 %v1498_v2  ;;  %v1503_v7 = vld [vmem:[%s2084_s1 + $0x18] sm:$0xff]   ;;  %v1505_v9 = vld [vmem:[%s2084_s1 + $0x20] sm:$0xff]   ;;  %v1506_v10 = vld [vmem:[%s2084_s1 + $0x68] sm:$0xff]   ;;  %322 = vst.msk [vmem:[#allocation2 + $0x10] sm:$0xff] %vm319_vm0, %v1645_v48 }
  0x37   : > { %v1514_v11 = vld [vmem:[%s1768_s13 + $0x4] ss:$8 sps:$4 sm:$0xff]   ;;  %v1508_v14 = vld [vmem:[%s2084_s1 + $0x70] sm:$0xff]   ;;  %v1510_v16 = vld [vmem:[%s2084_s1 + $0x78] sm:$0xff]   ;;  %323 = vst.msk [vmem:[#allocation2 + $0x18] sm:$0xff] %vm319_vm0, %v1645_v48 }
  0x38   : > { %v1517_v12 = vld [vmem:[%s1768_s13 + $0x84] ss:$8 sps:$4 sm:$0xff]   ;;  %736 = vmatprep.mubr.bf16.mxu0 %v1514_v11  ;;  %v1509_v15 = vld [vmem:[%s2084_s1 + $0x30] sm:$0xff]   ;;  %v1511_v17 = vld [vmem:[%s2084_s1 + $0x38] sm:$0xff]   ;;  %324 = vst.msk [vmem:[#allocation2 + $0x20] sm:$0xff] %vm319_vm0, %v1645_v48 }
  0x39   : > { %1313 = vmatpush3.bf16.msra.mxu0 %v1499_v3  ;;  %1431 = vmatpush3.bf16.msra.mxu1 %v1499_v3  ;;  %v1507_v13 = vld [vmem:[%s2084_s1 + $0x28] sm:$0xff]   ;;  %v1518_v20 = vld [vmem:[%s1768_s13 + $0x14] ss:$8 sps:$4 sm:$0xff]   ;;  %v1522_v22 = vld [vmem:[%s1768_s13 + $0x10] ss:$8 sps:$4 sm:$0xff]   ;;  %325 = vst.msk [vmem:[#allocation2 + $0x28] sm:$0xff] %vm319_vm0, %v1645_v48 }
  0x3a   : > { %1314 = vmatprep.subr.bf16.mxu0 %v1500_v4  ;;  %1424 = vmatprep.subr.bf16.mxu1 %v1500_v4  ;;  %v1512_v18 = vld [vmem:[%s1768_s13] ss:$8 sps:$4 sm:$0xff]   ;;  %v1520_v21 = vld [vmem:[%s1768_s13 + $0x94] ss:$8 sps:$4 sm:$0xff]   ;;  %v1523_v23 = vld [vmem:[%s1768_s13 + $0x90] ss:$8 sps:$4 sm:$0xff]  }
  0x3b   : > { %800 = vmatprep.mubr.bf16.mxu1 %v1517_v12  ;;  %v1515_v19 = vld [vmem:[%s1768_s13 + $0x80] ss:$8 sps:$4 sm:$0xff]   ;;  %v1524_v24 = vld [vmem:[%s1768_s13 + $0x24] ss:$8 sps:$4 sm:$0xff]   ;;  %v1530_v28 = vld [vmem:[%s1768_s13 + $0x34] ss:$8 sps:$4 sm:$0xff]  }
  0x3c   : > { %v1526_v25 = vld [vmem:[%s1768_s13 + $0xa4] ss:$8 sps:$4 sm:$0xff]   ;;  %v1528_v26 = vld [vmem:[%s1768_s13 + $0x20] ss:$8 sps:$4 sm:$0xff]   ;;  %v1532_v29 = vld [vmem:[%s1768_s13 + $0xb4] ss:$8 sps:$4 sm:$0xff]  }
  0x3d   : > { %1315 = vmatpush3.bf16.msra.mxu0 %v1501_v5  ;;  %1432 = vmatpush3.bf16.msra.mxu1 %v1501_v5  ;;  %v1529_v27 = vld [vmem:[%s1768_s13 + $0xa0] ss:$8 sps:$4 sm:$0xff]   ;;  %v1534_v30 = vld [vmem:[%s1768_s13 + $0x30] ss:$8 sps:$4 sm:$0xff]   ;;  %v1536_v32 = vld [vmem:[%s1768_s13 + $0x44] ss:$8 sps:$4 sm:$0xff]  }
  0x3e   : > { %1316 = vmatprep.subr.bf16.mxu0 %v1502_v6  ;;  %1425 = vmatprep.subr.bf16.mxu1 %v1502_v6  ;;  %v1535_v31 = vld [vmem:[%s1768_s13 + $0xb0] ss:$8 sps:$4 sm:$0xff]   ;;  %v1538_v33 = vld [vmem:[%s1768_s13 + $0xc4] ss:$8 sps:$4 sm:$0xff]   ;;  %v1540_v34 = vld [vmem:[%s1768_s13 + $0x40] ss:$8 sps:$4 sm:$0xff]  }
  0x3f   : > { %v1541_v35 = vld [vmem:[%s1768_s13 + $0xc0] ss:$8 sps:$4 sm:$0xff]   ;;  %v1542_v36 = vld [vmem:[%s1768_s13 + $0x54] ss:$8 sps:$4 sm:$0xff]   ;;  %v1546_v38 = vld [vmem:[%s1768_s13 + $0x50] ss:$8 sps:$4 sm:$0xff]  }
  0x40   : > { %v1544_v37 = vld [vmem:[%s1768_s13 + $0xd4] ss:$8 sps:$4 sm:$0xff]   ;;  %v1547_v39 = vld [vmem:[%s1768_s13 + $0xd0] ss:$8 sps:$4 sm:$0xff]   ;;  %v1548_v40 = vld [vmem:[%s1768_s13 + $0x64] ss:$8 sps:$4 sm:$0xff]  }
  0x41   : > { %1317 = vmatpush3.bf16.msra.mxu0 %v1503_v7  ;;  %1433 = vmatpush3.bf16.msra.mxu1 %v1503_v7  ;;  %v1550_v41 = vld [vmem:[%s1768_s13 + $0xe4] ss:$8 sps:$4 sm:$0xff]   ;;  %v1552_v42 = vld [vmem:[%s1768_s13 + $0x60] ss:$8 sps:$4 sm:$0xff]   ;;  %v1554_v44 = vld [vmem:[%s1768_s13 + $0x74] ss:$8 sps:$4 sm:$0xff]  }
  0x42   : > { %1318 = vmatprep.subr.bf16.mxu0 %v1504_v8  ;;  %1426 = vmatprep.subr.bf16.mxu1 %v1504_v8  ;;  %v1553_v43 = vld [vmem:[%s1768_s13 + $0xe0] ss:$8 sps:$4 sm:$0xff]   ;;  %v1556_v45 = vld [vmem:[%s1768_s13 + $0xf4] ss:$8 sps:$4 sm:$0xff]   ;;  %v1558_v46 = vld [vmem:[%s1768_s13 + $0x70] ss:$8 sps:$4 sm:$0xff]  }
  0x43   : > { %v1559_v47 = vld [vmem:[%s1768_s13 + $0xf0] ss:$8 sps:$4 sm:$0xff]   ;;  %326 = vst.msk [vmem:[#allocation2 + $0x30] sm:$0xff] %vm319_vm0, %v1645_v48  ;;  %327 = vst.msk [vmem:[#allocation2 + $0x38] sm:$0xff] %vm319_vm0, %v1645_v48  ;;  %v352_v51 = vld [vmem:[#allocation2] sm:$0xff]  ;;  %s1254_s13 = sshll.u32 %s1632_s18, 5 }
  0x44   : > { %328 = vst.msk [vmem:[#allocation2 + $0x40] sm:$0xff] %vm319_vm0, %v1645_v48  ;;  %329 = vst.msk [vmem:[#allocation2 + $0x48] sm:$0xff] %vm319_vm0, %v1645_v48  ;;  %v353_v59 = vld [vmem:[#allocation2 + $0x8] sm:$0xff]  ;;  %p306_p7 = scmp.lt.s32.totalorder %s1254_s13, 255  ;;  %v354_v7 = vld [vmem:[#allocation2 + $0x10] sm:$0xff] }
  0x45   : > { %1319 = vmatpush3.bf16.msra.mxu0 %v1505_v9  ;;  %1434 = vmatpush3.bf16.msra.mxu1 %v1505_v9  ;;  %330 = vst.msk [vmem:[#allocation2 + $0x50] sm:$0xff] %vm319_vm0, %v1645_v48  ;;  %331 = vst.msk [vmem:[#allocation2 + $0x58] sm:$0xff] %vm319_vm0, %v1645_v48 }
  0x46   : > { %1320 = vmatprep.subr.bf16.mxu0 %v1506_v10  ;;  %1427 = vmatprep.subr.bf16.mxu1 %v1506_v10  ;;  %332 = vst.msk [vmem:[#allocation2 + $0x60] sm:$0xff] %vm319_vm0, %v1645_v48  ;;  %333 = vst.msk [vmem:[#allocation2 + $0x68] sm:$0xff] %vm319_vm0, %v1645_v48  ;;  %s2099_s13 = smov (!%p306_p7, %s1254_s13), 255 }
  0x47   : > { %334 = vst.msk [vmem:[#allocation2 + $0x70] sm:$0xff] %vm319_vm0, %v1645_v48  ;;  %335 = vst.msk [vmem:[#allocation2 + $0x78] sm:$0xff] %vm319_vm0, %v1645_v48  ;;  %s1255_s12 = sshll.u32 %s2099_s13, 3 }
  0x48   : > { %336 = vst.msk [vmem:[#allocation2 + $0x80] sm:$0xff] %vm319_vm0, %v1645_v48  ;;  %337 = vst.msk [vmem:[#allocation2 + $0x88] sm:$0xff] %vm319_vm0, %v1645_v48  ;;  %s1917_s7 = scalar_lea.vmem %s2087_s4, %s1255_s12 }
  0x49   : > { %1321 = vmatpush3.bf16.msra.mxu0 %v1507_v13  ;;  %1435 = vmatpush3.bf16.msra.mxu1 %v1507_v13  ;;  %338 = vst.msk [vmem:[#allocation2 + $0x90] sm:$0xff] %vm319_vm0, %v1645_v48  ;;  %339 = vst.msk [vmem:[#allocation2 + $0x98] sm:$0xff] %vm319_vm0, %v1645_v48 }
  0x4a   : > { %1322 = vmatprep.subr.bf16.mxu0 %v1508_v14  ;;  %1428 = vmatprep.subr.bf16.mxu1 %v1508_v14  ;;  %340 = vst.msk [vmem:[#allocation2 + $0xa0] sm:$0xff] %vm319_vm0, %v1645_v48  ;;  %341 = vst.msk [vmem:[#allocation2 + $0xa8] sm:$0xff] %vm319_vm0, %v1645_v48 }
  0x4b   : > { %342 = vst.msk [vmem:[#allocation2 + $0xb0] sm:$0xff] %vm319_vm0, %v1645_v48  ;;  %343 = vst.msk [vmem:[#allocation2 + $0xb8] sm:$0xff] %vm319_vm0, %v1645_v48 }
  0x4c   : > { %344 = vst.msk [vmem:[#allocation2 + $0xc0] sm:$0xff] %vm319_vm0, %v1645_v48  ;;  %345 = vst.msk [vmem:[#allocation2 + $0xc8] sm:$0xff] %vm319_vm0, %v1645_v48 }
  0x4d   : > { %1323 = vmatpush3.bf16.msra.mxu0 %v1509_v15  ;;  %1436 = vmatpush3.bf16.msra.mxu1 %v1509_v15  ;;  %346 = vst.msk [vmem:[#allocation2 + $0xd0] sm:$0xff] %vm319_vm0, %v1645_v48  ;;  %347 = vst.msk [vmem:[#allocation2 + $0xd8] sm:$0xff] %vm319_vm0, %v1645_v48  ;;  %v1896_v15 = vld [vmem:[%s2085_s2] ss:$0 sm:$0xff] }
  0x4e   : > { %1324 = vmatprep.subr.bf16.mxu0 %v1510_v16  ;;  %1429 = vmatprep.subr.bf16.mxu1 %v1510_v16  ;;  %348 = vst.msk [vmem:[#allocation2 + $0xe0] sm:$0xff] %vm319_vm0, %v1645_v48  ;;  %349 = vst.msk [vmem:[#allocation2 + $0xe8] sm:$0xff] %vm319_vm0, %v1645_v48  ;;  %v355_v16 = vld [vmem:[#allocation2 + $0x18] sm:$0xff] }
  0x4f   : > { %350 = vst.msk [vmem:[#allocation2 + $0xf0] sm:$0xff] %vm319_vm0, %v1645_v48  ;;  %351 = vst.msk [vmem:[#allocation2 + $0xf8] sm:$0xff] %vm319_vm0, %v1645_v48  ;;  %v368_v53 = vld [vmem:[#allocation2 + $0x80] sm:$0xff]  ;;  %v369_v61 = vld [vmem:[#allocation2 + $0x88] sm:$0xff] }
  0x50   : > { %v370_v9 = vld [vmem:[#allocation2 + $0x90] sm:$0xff] }
  0x51   : > { %1325 = vmatpush3.bf16.msra.mxu0 %v1511_v17  ;;  %1437 = vmatpush3.bf16.msra.mxu1 %v1511_v17 }
  0x54   : > { %737 = vmatmul.mubr.bf16.vlgmr.msra.gmra.mrb[0].mxu0 %v1512_v18  ;;  %801 = vmatmul.mubr.bf16.vlgmr.msra.gmra.mrb[0].mxu1 %v1515_v19  ;;  %v371_v18 = vld [vmem:[#allocation2 + $0x98] sm:$0xff] }
  0x55   : > { %744 = vmatprep.mubr.bf16.mxu0 %v1518_v20  ;;  %808 = vmatprep.mubr.bf16.mxu1 %v1520_v21 }
  0x5c   : > { %745 = vmatmul.mubr.bf16.gmra.mrb[4].mxu0 %v1522_v22  ;;  %809 = vmatmul.mubr.bf16.gmra.mrb[4].mxu1 %v1523_v23 }
  0x5d   : > { %752 = vmatprep.mubr.bf16.mxu0 %v1524_v24  ;;  %816 = vmatprep.mubr.bf16.mxu1 %v1526_v25  ;;  %v1901_v25 = vld [vmem:[%s2086_s3] ss:$0 sm:$0xff] }
  0x64   : > { %753 = vmatmul.mubr.bf16.gmra.mrb[8].mxu0 %v1528_v26  ;;  %817 = vmatmul.mubr.bf16.gmra.mrb[8].mxu1 %v1529_v27 }
  0x65   : > { %760 = vmatprep.mubr.bf16.mxu0 %v1530_v28  ;;  %824 = vmatprep.mubr.bf16.mxu1 %v1532_v29 }
  0x6c   : > { %761 = vmatmul.mubr.bf16.gmra.mrb[12].mxu0 %v1534_v30  ;;  %825 = vmatmul.mubr.bf16.gmra.mrb[12].mxu1 %v1535_v31 }
  0x6d   : > { %768 = vmatprep.mubr.bf16.mxu0 %v1536_v32  ;;  %832 = vmatprep.mubr.bf16.mxu1 %v1538_v33 }
  0x74   : > { %769 = vmatmul.mubr.bf16.gmra.mrb[16].mxu0 %v1540_v34  ;;  %833 = vmatmul.mubr.bf16.gmra.mrb[16].mxu1 %v1541_v35 }
  0x75   : > { %776 = vmatprep.mubr.bf16.mxu0 %v1542_v36  ;;  %840 = vmatprep.mubr.bf16.mxu1 %v1544_v37 }
  0x7c   : > { %777 = vmatmul.mubr.bf16.gmra.mrb[20].mxu0 %v1546_v38  ;;  %841 = vmatmul.mubr.bf16.gmra.mrb[20].mxu1 %v1547_v39 }
  0x7d   : > { %784 = vmatprep.mubr.bf16.mxu0 %v1548_v40  ;;  %848 = vmatprep.mubr.bf16.mxu1 %v1550_v41 }
  0x84   : > { %785 = vmatmul.mubr.bf16.gmra.mrb[24].mxu0 %v1552_v42  ;;  %849 = vmatmul.mubr.bf16.gmra.mrb[24].mxu1 %v1553_v43 }
  0x85   : > { %792 = vmatprep.mubr.bf16.mxu0 %v1554_v44  ;;  %856 = vmatprep.mubr.bf16.mxu1 %v1556_v45  ;;  %v356_v45 = vld [vmem:[#allocation2 + $0x20] sm:$0xff] }
  0x8c   : > { %793 = vmatmul.mubr.bf16.gmra.mrb[28].mxu0 %v1558_v46  ;;  %857 = vmatmul.mubr.bf16.gmra.mrb[28].mxu1 %v1559_v47  ;;  %v372_v46 = vld [vmem:[#allocation2 + $0xa0] sm:$0xff] }
 0x127   : > { %v1326_v49 = vpop.f32.mrb[0].mxu0  ;;  %v1374_v50 = vpop.f32.mrb[0].mxu1 }
 0x128   : > { %v1327_v52 = vpop.f32.mrb[1].mxu0  ;;  %v1375_v54 = vpop.f32.mrb[1].mxu1 }
 0x129   : > { %v1328_v55 = vadd.f32 %v1327_v52, %v1326_v49  ;;  %v1376_v56 = vadd.f32 %v1375_v54, %v1374_v50  ;;  %v1329_v57 = vpop.f32.mrb[2].mxu0  ;;  %v1377_v58 = vpop.f32.mrb[2].mxu1 }
 0x12a   : > { %v1330_v60 = vpop.f32.mrb[3].mxu0  ;;  %v1378_v62 = vpop.f32.mrb[3].mxu1 }
 0x12b   : > { %v865_v63 = vadd.f32 %v1328_v55, %v352_v51  ;;  %v881_v0 = vadd.f32 %v1376_v56, %v368_v53  ;;  %v1331_v1 = vadd.f32 %v1330_v60, %v1329_v57  ;;  %v1379_v2 = vadd.f32 %v1378_v62, %v1377_v58  ;;  %v357_v51 = vld [vmem:[#allocation2 + $0x28] sm:$0xff] }
 0x12c   : > { %v373_v53 = vld [vmem:[#allocation2 + $0xa8] sm:$0xff] }
 0x12d   : > { %898 = vst.msk [vmem:[#allocation2] sm:$0xff] %vm319_vm0, %v865_v63  ;;  %914 = vst.msk [vmem:[#allocation2 + $0x80] sm:$0xff] %vm319_vm0, %v881_v0  ;;  %v866_v3 = vadd.f32 %v1331_v1, %v353_v59  ;;  %v882_v4 = vadd.f32 %v1379_v2, %v369_v61 }
 0x12f   : > { %899 = vst.msk [vmem:[#allocation2 + $0x8] sm:$0xff] %vm319_vm0, %v866_v3  ;;  %915 = vst.msk [vmem:[#allocation2 + $0x88] sm:$0xff] %vm319_vm0, %v882_v4  ;;  %v1332_v5 = vpop.f32.mrb[4].mxu0  ;;  %v1380_v6 = vpop.f32.mrb[4].mxu1 }
 0x130   : > { %v1333_v8 = vpop.f32.mrb[5].mxu0  ;;  %v1381_v10 = vpop.f32.mrb[5].mxu1 }
 0x131   : > { %v1334_v11 = vadd.f32 %v1333_v8, %v1332_v5  ;;  %v1382_v12 = vadd.f32 %v1381_v10, %v1380_v6  ;;  %v1335_v13 = vpop.f32.mrb[6].mxu0  ;;  %v1383_v14 = vpop.f32.mrb[6].mxu1 }
 0x132   : > { %v1336_v17 = vpop.f32.mrb[7].mxu0  ;;  %v1384_v19 = vpop.f32.mrb[7].mxu1 }
 0x133   : > { %v867_v20 = vadd.f32 %v1334_v11, %v354_v7  ;;  %v883_v21 = vadd.f32 %v1382_v12, %v370_v9  ;;  %v1337_v22 = vadd.f32 %v1336_v17, %v1335_v13  ;;  %v1385_v23 = vadd.f32 %v1384_v19, %v1383_v14  ;;  %v374_v19 = vld [vmem:[#allocation2 + $0xb0] sm:$0xff] }
 0x134   : > { %v933_v24 = vld [vmem:[#allocation2] sm:$0xff] }
 0x135   : > { %v949_v26 = vld [vmem:[#allocation2 + $0x80] sm:$0xff]  ;;  %v972_v27 = vmul.f32 %v1896_v15, %v933_v24  ;;  %900 = vst.msk [vmem:[#allocation2 + $0x10] sm:$0xff] %vm319_vm0, %v867_v20  ;;  %916 = vst.msk [vmem:[#allocation2 + $0x90] sm:$0xff] %vm319_vm0, %v883_v21  ;;  %v868_v29 = vadd.f32 %v1337_v22, %v355_v16  ;;  %v884_v30 = vadd.f32 %v1385_v23, %v371_v18  ;;  %v358_v18 = vld [vmem:[#allocation2 + $0x30] sm:$0xff] }
 0x136   : > { %v988_v28 = vmul.f32 %v1896_v15, %v949_v26  ;;  %v934_v31 = vld [vmem:[#allocation2 + $0x8] sm:$0xff]  ;;  %v359_v24 = vld [vmem:[#allocation2 + $0x38] sm:$0xff] }
 0x137   : > { %v950_v32 = vld [vmem:[#allocation2 + $0x88] sm:$0xff]  ;;  %v1011_v33 = vadd.f32 %v1901_v25, %v972_v27  ;;  %v973_v35 = vmul.f32 %v1896_v15, %v934_v31  ;;  %901 = vst.msk [vmem:[#allocation2 + $0x18] sm:$0xff] %vm319_vm0, %v868_v29  ;;  %917 = vst.msk [vmem:[#allocation2 + $0x98] sm:$0xff] %vm319_vm0, %v884_v30  ;;  %v1338_v37 = vpop.f32.mrb[8].mxu0  ;;  %v1386_v38 = vpop.f32.mrb[8].mxu1  ;;  %v375_v27 = vld [vmem:[#allocation2 + $0xb8] sm:$0xff] }
 0x138   : > { %v1027_v34 = vadd.f32 %v1901_v25, %v988_v28  ;;  %v989_v36 = vmul.f32 %v1896_v15, %v950_v32  ;;  %v1339_v39 = vpop.f32.mrb[9].mxu0  ;;  %v1387_v40 = vpop.f32.mrb[9].mxu1 }
 0x139   : > { %v1043_v41 = vmax.f32 %v1011_v33, 0.0  ;;  %v1012_v43 = vadd.f32 %v1901_v25, %v973_v35  ;;  %v1341_v47 = vpop.f32.mrb[10].mxu0  ;;  %v1389_v48 = vpop.f32.mrb[10].mxu1  ;;  %v1340_v49 = vadd.f32 %v1339_v39, %v1338_v37  ;;  %v1388_v50 = vadd.f32 %v1387_v40, %v1386_v38 }
 0x13a   : > { %v1059_v42 = vmax.f32 %v1027_v34, 0.0  ;;  %v1028_v44 = vadd.f32 %v1901_v25, %v989_v36  ;;  %v1342_v52 = vpop.f32.mrb[11].mxu0  ;;  %v1390_v54 = vpop.f32.mrb[11].mxu1 }
 0x13b   : > { %1075 = vst.msk [vmem:[%s1917_s7] sm:$0xff] %vm319_vm0, %v1043_v41  ;;  %v1044_v55 = vmax.f32 %v1012_v43, 0.0  ;;  %v1343_v57 = vadd.f32 %v1342_v52, %v1341_v47  ;;  %v1391_v58 = vadd.f32 %v1390_v54, %v1389_v48  ;;  %v869_v61 = vadd.f32 %v1340_v49, %v356_v45  ;;  %v360_v49 = vld [vmem:[#allocation2 + $0x40] sm:$0xff] }
 0x13c   : > { %1091 = vst.msk [vmem:[%s1917_s7 + $0x80] sm:$0xff] %vm319_vm0, %v1059_v42  ;;  %v1060_v56 = vmax.f32 %v1028_v44, 0.0  ;;  %v935_v59 = vld [vmem:[#allocation2 + $0x10] sm:$0xff]  ;;  %v885_v62 = vadd.f32 %v1388_v50, %v372_v46 }
 0x13d   : > { %v951_v60 = vld [vmem:[#allocation2 + $0x90] sm:$0xff]  ;;  %1076 = vst.msk [vmem:[%s1917_s7 + $0x8] sm:$0xff] %vm319_vm0, %v1044_v55  ;;  %v974_v63 = vmul.f32 %v1896_v15, %v935_v59  ;;  %v870_v1 = vadd.f32 %v1343_v57, %v357_v51  ;;  %v886_v2 = vadd.f32 %v1391_v58, %v373_v53  ;;  %902 = vst.msk [vmem:[#allocation2 + $0x20] sm:$0xff] %vm319_vm0, %v869_v61  ;;  %v376_v51 = vld [vmem:[#allocation2 + $0xc0] sm:$0xff] }
 0x13e   : > { %1092 = vst.msk [vmem:[%s1917_s7 + $0x88] sm:$0xff] %vm319_vm0, %v1060_v56  ;;  %v990_v0 = vmul.f32 %v1896_v15, %v951_v60  ;;  %v936_v3 = vld [vmem:[#allocation2 + $0x18] sm:$0xff]  ;;  %918 = vst.msk [vmem:[#allocation2 + $0xa0] sm:$0xff] %vm319_vm0, %v885_v62 }
 0x13f   : > { %v952_v4 = vld [vmem:[#allocation2 + $0x98] sm:$0xff]  ;;  %v1013_v5 = vadd.f32 %v1901_v25, %v974_v63  ;;  %v975_v7 = vmul.f32 %v1896_v15, %v936_v3  ;;  %903 = vst.msk [vmem:[#allocation2 + $0x28] sm:$0xff] %vm319_vm0, %v870_v1  ;;  %919 = vst.msk [vmem:[#allocation2 + $0xa8] sm:$0xff] %vm319_vm0, %v886_v2  ;;  %v1344_v9 = vpop.f32.mrb[12].mxu0  ;;  %v1392_v10 = vpop.f32.mrb[12].mxu1  ;;  %v361_v3 = vld [vmem:[#allocation2 + $0x48] sm:$0xff] }
 0x140   : > { %v1029_v6 = vadd.f32 %v1901_v25, %v990_v0  ;;  %v991_v8 = vmul.f32 %v1896_v15, %v952_v4  ;;  %v1345_v11 = vpop.f32.mrb[13].mxu0  ;;  %v1393_v12 = vpop.f32.mrb[13].mxu1  ;;  %v377_v4 = vld [vmem:[#allocation2 + $0xc8] sm:$0xff] }
 0x141   : > { %v1045_v13 = vmax.f32 %v1013_v5, 0.0  ;;  %v1014_v16 = vadd.f32 %v1901_v25, %v975_v7  ;;  %v1347_v20 = vpop.f32.mrb[14].mxu0  ;;  %v1395_v21 = vpop.f32.mrb[14].mxu1  ;;  %v1346_v22 = vadd.f32 %v1345_v11, %v1344_v9  ;;  %v1394_v23 = vadd.f32 %v1393_v12, %v1392_v10 }
 0x142   : > { %v1061_v14 = vmax.f32 %v1029_v6, 0.0  ;;  %v1030_v17 = vadd.f32 %v1901_v25, %v991_v8  ;;  %v1348_v26 = vpop.f32.mrb[15].mxu0  ;;  %v1396_v28 = vpop.f32.mrb[15].mxu1 }
 0x143   : > { %1077 = vst.msk [vmem:[%s1917_s7 + $0x10] sm:$0xff] %vm319_vm0, %v1045_v13  ;;  %v1046_v29 = vmax.f32 %v1014_v16, 0.0  ;;  %v1349_v31 = vadd.f32 %v1348_v26, %v1347_v20  ;;  %v1397_v32 = vadd.f32 %v1396_v28, %v1395_v21  ;;  %v871_v33 = vadd.f32 %v1346_v22, %v358_v18  ;;  %v362_v22 = vld [vmem:[#allocation2 + $0x50] sm:$0xff] }
 0x144   : > { %1093 = vst.msk [vmem:[%s1917_s7 + $0x90] sm:$0xff] %vm319_vm0, %v1061_v14  ;;  %v1062_v30 = vmax.f32 %v1030_v17, 0.0  ;;  %v887_v34 = vadd.f32 %v1394_v23, %v374_v19  ;;  %v937_v35 = vld [vmem:[#allocation2 + $0x20] sm:$0xff] }
 0x145   : > { %1078 = vst.msk [vmem:[%s1917_s7 + $0x18] sm:$0xff] %vm319_vm0, %v1046_v29  ;;  %v953_v36 = vld [vmem:[#allocation2 + $0xa0] sm:$0xff]  ;;  %v872_v37 = vadd.f32 %v1349_v31, %v359_v24  ;;  %v888_v38 = vadd.f32 %v1397_v32, %v375_v27  ;;  %v976_v39 = vmul.f32 %v1896_v15, %v937_v35  ;;  %904 = vst.msk [vmem:[#allocation2 + $0x30] sm:$0xff] %vm319_vm0, %v871_v33  ;;  %v378_v24 = vld [vmem:[#allocation2 + $0xd0] sm:$0xff] }
 0x146   : > { %1094 = vst.msk [vmem:[%s1917_s7 + $0x98] sm:$0xff] %vm319_vm0, %v1062_v30  ;;  %v992_v40 = vmul.f32 %v1896_v15, %v953_v36  ;;  %v938_v41 = vld [vmem:[#allocation2 + $0x28] sm:$0xff]  ;;  %920 = vst.msk [vmem:[#allocation2 + $0xb0] sm:$0xff] %vm319_vm0, %v887_v34 }
 0x147   : > { %v954_v42 = vld [vmem:[#allocation2 + $0xa8] sm:$0xff]  ;;  %v977_v43 = vmul.f32 %v1896_v15, %v938_v41  ;;  %905 = vst.msk [vmem:[#allocation2 + $0x38] sm:$0xff] %vm319_vm0, %v872_v37  ;;  %921 = vst.msk [vmem:[#allocation2 + $0xb8] sm:$0xff] %vm319_vm0, %v888_v38  ;;  %v1350_v45 = vpop.f32.mrb[16].mxu0  ;;  %v1398_v46 = vpop.f32.mrb[16].mxu1  ;;  %v1015_v47 = vadd.f32 %v1901_v25, %v976_v39  ;;  %v363_v41 = vld [vmem:[#allocation2 + $0x58] sm:$0xff] }
 0x148   : > { %v993_v44 = vmul.f32 %v1896_v15, %v954_v42  ;;  %v1031_v48 = vadd.f32 %v1901_v25, %v992_v40  ;;  %v1351_v50 = vpop.f32.mrb[17].mxu0  ;;  %v1399_v52 = vpop.f32.mrb[17].mxu1  ;;  %v379_v42 = vld [vmem:[#allocation2 + $0xd8] sm:$0xff] }
 0x149   : > { %v1016_v53 = vadd.f32 %v1901_v25, %v977_v43  ;;  %v1352_v55 = vadd.f32 %v1351_v50, %v1350_v45  ;;  %v1400_v56 = vadd.f32 %v1399_v52, %v1398_v46  ;;  %v1353_v57 = vpop.f32.mrb[18].mxu0  ;;  %v1401_v58 = vpop.f32.mrb[18].mxu1  ;;  %v1047_v59 = vmax.f32 %v1015_v47, 0.0 }
 0x14a   : > { %v1032_v54 = vadd.f32 %v1901_v25, %v993_v44  ;;  %v1063_v60 = vmax.f32 %v1031_v48, 0.0  ;;  %v1354_v61 = vpop.f32.mrb[19].mxu0  ;;  %v1402_v62 = vpop.f32.mrb[19].mxu1 }
 0x14b   : > { %v1048_v63 = vmax.f32 %v1016_v53, 0.0  ;;  %v873_v1 = vadd.f32 %v1352_v55, %v360_v49  ;;  %v889_v2 = vadd.f32 %v1400_v56, %v376_v51  ;;  %1079 = vst.msk [vmem:[%s1917_s7 + $0x20] sm:$0xff] %vm319_vm0, %v1047_v59  ;;  %v1355_v5 = vadd.f32 %v1354_v61, %v1353_v57  ;;  %v364_v59 = vld [vmem:[#allocation2 + $0x60] sm:$0xff] }
 0x14c   : > { %v1064_v0 = vmax.f32 %v1032_v54, 0.0  ;;  %1095 = vst.msk [vmem:[%s1917_s7 + $0xa0] sm:$0xff] %vm319_vm0, %v1063_v60  ;;  %v1403_v6 = vadd.f32 %v1402_v62, %v1401_v58  ;;  %v939_v7 = vld [vmem:[#allocation2 + $0x30] sm:$0xff]  ;;  %v380_v61 = vld [vmem:[#allocation2 + $0xe0] sm:$0xff] }
 0x14d   : > { %1080 = vst.msk [vmem:[%s1917_s7 + $0x28] sm:$0xff] %vm319_vm0, %v1048_v63  ;;  %v955_v8 = vld [vmem:[#allocation2 + $0xb0] sm:$0xff]  ;;  %906 = vst.msk [vmem:[#allocation2 + $0x40] sm:$0xff] %vm319_vm0, %v873_v1  ;;  %v978_v9 = vmul.f32 %v1896_v15, %v939_v7  ;;  %v874_v13 = vadd.f32 %v1355_v5, %v361_v3  ;;  %v365_v7 = vld [vmem:[#allocation2 + $0x68] sm:$0xff] }
 0x14e   : > { %1096 = vst.msk [vmem:[%s1917_s7 + $0xa8] sm:$0xff] %vm319_vm0, %v1064_v0  ;;  %922 = vst.msk [vmem:[#allocation2 + $0xc0] sm:$0xff] %vm319_vm0, %v889_v2  ;;  %v994_v10 = vmul.f32 %v1896_v15, %v955_v8  ;;  %v940_v11 = vld [vmem:[#allocation2 + $0x38] sm:$0xff]  ;;  %v890_v14 = vadd.f32 %v1403_v6, %v377_v4 }
 0x14f   : > { %v956_v12 = vld [vmem:[#allocation2 + $0xb8] sm:$0xff]  ;;  %v979_v16 = vmul.f32 %v1896_v15, %v940_v11  ;;  %v1356_v18 = vpop.f32.mrb[20].mxu0  ;;  %v1404_v19 = vpop.f32.mrb[20].mxu1  ;;  %v1017_v20 = vadd.f32 %v1901_v25, %v978_v9  ;;  %907 = vst.msk [vmem:[#allocation2 + $0x48] sm:$0xff] %vm319_vm0, %v874_v13  ;;  %v381_v9 = vld [vmem:[#allocation2 + $0xe8] sm:$0xff] }
 0x150   : > { %v995_v17 = vmul.f32 %v1896_v15, %v956_v12  ;;  %v1033_v21 = vadd.f32 %v1901_v25, %v994_v10  ;;  %923 = vst.msk [vmem:[#allocation2 + $0xc8] sm:$0xff] %vm319_vm0, %v890_v14  ;;  %v1357_v23 = vpop.f32.mrb[21].mxu0  ;;  %v1405_v26 = vpop.f32.mrb[21].mxu1 }
 0x151   : > { %v1018_v27 = vadd.f32 %v1901_v25, %v979_v16  ;;  %v1358_v29 = vadd.f32 %v1357_v23, %v1356_v18  ;;  %v1406_v30 = vadd.f32 %v1405_v26, %v1404_v19  ;;  %v1359_v31 = vpop.f32.mrb[22].mxu0  ;;  %v1407_v32 = vpop.f32.mrb[22].mxu1  ;;  %v1049_v33 = vmax.f32 %v1017_v20, 0.0 }
 0x152   : > { %v1034_v28 = vadd.f32 %v1901_v25, %v995_v17  ;;  %v1065_v34 = vmax.f32 %v1033_v21, 0.0  ;;  %v1360_v35 = vpop.f32.mrb[23].mxu0  ;;  %v1408_v36 = vpop.f32.mrb[23].mxu1 }
 0x153   : > { %v1050_v37 = vmax.f32 %v1018_v27, 0.0  ;;  %v875_v39 = vadd.f32 %v1358_v29, %v362_v22  ;;  %v891_v40 = vadd.f32 %v1406_v30, %v378_v24  ;;  %1081 = vst.msk [vmem:[%s1917_s7 + $0x30] sm:$0xff] %vm319_vm0, %v1049_v33  ;;  %v1361_v45 = vadd.f32 %v1360_v35, %v1359_v31  ;;  %v366_v33 = vld [vmem:[#allocation2 + $0x70] sm:$0xff] }
 0x154   : > { %v1066_v38 = vmax.f32 %v1034_v28, 0.0  ;;  %1097 = vst.msk [vmem:[%s1917_s7 + $0xb0] sm:$0xff] %vm319_vm0, %v1065_v34  ;;  %v941_v43 = vld [vmem:[#allocation2 + $0x40] sm:$0xff]  ;;  %v1409_v46 = vadd.f32 %v1408_v36, %v1407_v32  ;;  %v382_v35 = vld [vmem:[#allocation2 + $0xf0] sm:$0xff] }
 0x155   : > { %v957_v44 = vld [vmem:[#allocation2 + $0xc0] sm:$0xff]  ;;  %1082 = vst.msk [vmem:[%s1917_s7 + $0x38] sm:$0xff] %vm319_vm0, %v1050_v37  ;;  %v980_v47 = vmul.f32 %v1896_v15, %v941_v43  ;;  %908 = vst.msk [vmem:[#allocation2 + $0x50] sm:$0xff] %vm319_vm0, %v875_v39  ;;  %v876_v49 = vadd.f32 %v1361_v45, %v363_v41  ;;  %v367_v45 = vld [vmem:[#allocation2 + $0x78] sm:$0xff] }
 0x156   : > { %1098 = vst.msk [vmem:[%s1917_s7 + $0xb8] sm:$0xff] %vm319_vm0, %v1066_v38  ;;  %v996_v48 = vmul.f32 %v1896_v15, %v957_v44  ;;  %924 = vst.msk [vmem:[#allocation2 + $0xd0] sm:$0xff] %vm319_vm0, %v891_v40  ;;  %v892_v50 = vadd.f32 %v1409_v46, %v379_v42  ;;  %v942_v53 = vld [vmem:[#allocation2 + $0x48] sm:$0xff] }
 0x157   : > { %v1019_v51 = vadd.f32 %v1901_v25, %v980_v47  ;;  %v958_v54 = vld [vmem:[#allocation2 + $0xc8] sm:$0xff]  ;;  %v1362_v55 = vpop.f32.mrb[24].mxu0  ;;  %v1410_v56 = vpop.f32.mrb[24].mxu1  ;;  %v981_v57 = vmul.f32 %v1896_v15, %v942_v53  ;;  %909 = vst.msk [vmem:[#allocation2 + $0x58] sm:$0xff] %vm319_vm0, %v876_v49  ;;  %v383_v47 = vld [vmem:[#allocation2 + $0xf8] sm:$0xff] }
 0x158   : > { %v1035_v52 = vadd.f32 %v1901_v25, %v996_v48  ;;  %v997_v58 = vmul.f32 %v1896_v15, %v958_v54  ;;  %925 = vst.msk [vmem:[#allocation2 + $0xd8] sm:$0xff] %vm319_vm0, %v892_v50  ;;  %v1363_v60 = vpop.f32.mrb[25].mxu0  ;;  %v1411_v62 = vpop.f32.mrb[25].mxu1 }
 0x159   : > { %v1051_v63 = vmax.f32 %v1019_v51, 0.0  ;;  %v1364_v1 = vadd.f32 %v1363_v60, %v1362_v55  ;;  %v1412_v2 = vadd.f32 %v1411_v62, %v1410_v56  ;;  %v1365_v3 = vpop.f32.mrb[26].mxu0  ;;  %v1413_v4 = vpop.f32.mrb[26].mxu1  ;;  %v1020_v5 = vadd.f32 %v1901_v25, %v981_v57 }
 0x15a   : > { %v1067_v0 = vmax.f32 %v1035_v52, 0.0  ;;  %v1036_v6 = vadd.f32 %v1901_v25, %v997_v58  ;;  %v1366_v8 = vpop.f32.mrb[27].mxu0  ;;  %v1414_v10 = vpop.f32.mrb[27].mxu1 }
 0x15b   : > { %1083 = vst.msk [vmem:[%s1917_s7 + $0x40] sm:$0xff] %vm319_vm0, %v1051_v63  ;;  %v877_v11 = vadd.f32 %v1364_v1, %v364_v59  ;;  %v893_v12 = vadd.f32 %v1412_v2, %v380_v61  ;;  %v1367_v13 = vadd.f32 %v1366_v8, %v1365_v3  ;;  %v1415_v14 = vadd.f32 %v1414_v10, %v1413_v4 }
 0x15c   : > { %1099 = vst.msk [vmem:[%s1917_s7 + $0xc0] sm:$0xff] %vm319_vm0, %v1067_v0  ;;  %v1052_v16 = vmax.f32 %v1020_v5, 0.0  ;;  %v1068_v17 = vmax.f32 %v1036_v6, 0.0  ;;  %v943_v18 = vld [vmem:[#allocation2 + $0x50] sm:$0xff] }
 0x15d   : > { %v959_v19 = vld [vmem:[#allocation2 + $0xd0] sm:$0xff]  ;;  %v982_v20 = vmul.f32 %v1896_v15, %v943_v18  ;;  %910 = vst.msk [vmem:[#allocation2 + $0x60] sm:$0xff] %vm319_vm0, %v877_v11  ;;  %926 = vst.msk [vmem:[#allocation2 + $0xe0] sm:$0xff] %vm319_vm0, %v893_v12  ;;  %v878_v22 = vadd.f32 %v1367_v13, %v365_v7  ;;  %v894_v23 = vadd.f32 %v1415_v14, %v381_v9 }
 0x15e   : > { %v998_v21 = vmul.f32 %v1896_v15, %v959_v19  ;;  %1084 = vst.msk [vmem:[%s1917_s7 + $0x48] sm:$0xff] %vm319_vm0, %v1052_v16  ;;  %1100 = vst.msk [vmem:[%s1917_s7 + $0xc8] sm:$0xff] %vm319_vm0, %v1068_v17  ;;  %v944_v27 = vld [vmem:[#allocation2 + $0x58] sm:$0xff] }
 0x15f   : > { %v1021_v24 = vadd.f32 %v1901_v25, %v982_v20  ;;  %v960_v28 = vld [vmem:[#allocation2 + $0xd8] sm:$0xff]  ;;  %911 = vst.msk [vmem:[#allocation2 + $0x68] sm:$0xff] %vm319_vm0, %v878_v22  ;;  %927 = vst.msk [vmem:[#allocation2 + $0xe8] sm:$0xff] %vm319_vm0, %v894_v23  ;;  %v1368_v29 = vpop.f32.mrb[28].mxu0  ;;  %v1416_v30 = vpop.f32.mrb[28].mxu1  ;;  %v983_v31 = vmul.f32 %v1896_v15, %v944_v27 }
 0x160   : > { %v1037_v26 = vadd.f32 %v1901_v25, %v998_v21  ;;  %v999_v32 = vmul.f32 %v1896_v15, %v960_v28  ;;  %v1369_v34 = vpop.f32.mrb[29].mxu0  ;;  %v1417_v36 = vpop.f32.mrb[29].mxu1 }
 0x161   : > { %v1053_v37 = vmax.f32 %v1021_v24, 0.0  ;;  %v1370_v39 = vadd.f32 %v1369_v34, %v1368_v29  ;;  %v1418_v40 = vadd.f32 %v1417_v36, %v1416_v30  ;;  %v1371_v41 = vpop.f32.mrb[30].mxu0  ;;  %v1419_v42 = vpop.f32.mrb[30].mxu1  ;;  %v1022_v43 = vadd.f32 %v1901_v25, %v983_v31 }
 0x162   : > { %v1069_v38 = vmax.f32 %v1037_v26, 0.0  ;;  %v1038_v44 = vadd.f32 %v1901_v25, %v999_v32  ;;  %v1372_v46 = vpop.f32.mrb[31].mxu0  ;;  %v1420_v48 = vpop.f32.mrb[31].mxu1 }
 0x163   : > { %1085 = vst.msk [vmem:[%s1917_s7 + $0x50] sm:$0xff] %vm319_vm0, %v1053_v37  ;;  %v879_v49 = vadd.f32 %v1370_v39, %v366_v33  ;;  %v895_v50 = vadd.f32 %v1418_v40, %v382_v35  ;;  %v1373_v51 = vadd.f32 %v1372_v46, %v1371_v41  ;;  %v1421_v52 = vadd.f32 %v1420_v48, %v1419_v42 }
 0x164   : > { %1101 = vst.msk [vmem:[%s1917_s7 + $0xd0] sm:$0xff] %vm319_vm0, %v1069_v38  ;;  %v1054_v53 = vmax.f32 %v1022_v43, 0.0  ;;  %v1070_v54 = vmax.f32 %v1038_v44, 0.0  ;;  %v945_v55 = vld [vmem:[#allocation2 + $0x60] sm:$0xff] }
 0x165   : > { %v961_v56 = vld [vmem:[#allocation2 + $0xe0] sm:$0xff]  ;;  %v984_v57 = vmul.f32 %v1896_v15, %v945_v55  ;;  %912 = vst.msk [vmem:[#allocation2 + $0x70] sm:$0xff] %vm319_vm0, %v879_v49  ;;  %928 = vst.msk [vmem:[#allocation2 + $0xf0] sm:$0xff] %vm319_vm0, %v895_v50  ;;  %v880_v59 = vadd.f32 %v1373_v51, %v367_v45  ;;  %v896_v60 = vadd.f32 %v1421_v52, %v383_v47 }
 0x166   : > { %v1000_v58 = vmul.f32 %v1896_v15, %v961_v56  ;;  %1086 = vst.msk [vmem:[%s1917_s7 + $0x58] sm:$0xff] %vm319_vm0, %v1054_v53  ;;  %1102 = vst.msk [vmem:[%s1917_s7 + $0xd8] sm:$0xff] %vm319_vm0, %v1070_v54  ;;  %v946_v61 = vld [vmem:[#allocation2 + $0x68] sm:$0xff] }
 0x167   : > { %v962_v62 = vld [vmem:[#allocation2 + $0xe8] sm:$0xff]  ;;  %v1023_v63 = vadd.f32 %v1901_v25, %v984_v57  ;;  %v985_v1 = vmul.f32 %v1896_v15, %v946_v61  ;;  %913 = vst.msk [vmem:[#allocation2 + $0x78] sm:$0xff] %vm319_vm0, %v880_v59  ;;  %929 = vst.msk [vmem:[#allocation2 + $0xf8] sm:$0xff] %vm319_vm0, %v896_v60 }
 0x168   : > { %v1039_v0 = vadd.f32 %v1901_v25, %v1000_v58  ;;  %v1001_v2 = vmul.f32 %v1896_v15, %v962_v62 }
 0x169   : > { %v1055_v3 = vmax.f32 %v1023_v63, 0.0  ;;  %v1024_v5 = vadd.f32 %v1901_v25, %v985_v1 }
 0x16a   : > { %v1071_v4 = vmax.f32 %v1039_v0, 0.0  ;;  %v1040_v6 = vadd.f32 %v1901_v25, %v1001_v2 }
 0x16b   : > { %1087 = vst.msk [vmem:[%s1917_s7 + $0x60] sm:$0xff] %vm319_vm0, %v1055_v3  ;;  %v1056_v7 = vmax.f32 %v1024_v5, 0.0 }
 0x16c   : > { %1103 = vst.msk [vmem:[%s1917_s7 + $0xe0] sm:$0xff] %vm319_vm0, %v1071_v4  ;;  %v1072_v8 = vmax.f32 %v1040_v6, 0.0  ;;  %v947_v9 = vld [vmem:[#allocation2 + $0x70] sm:$0xff] }
 0x16d   : > { %v963_v10 = vld [vmem:[#allocation2 + $0xf0] sm:$0xff]  ;;  %1088 = vst.msk [vmem:[%s1917_s7 + $0x68] sm:$0xff] %vm319_vm0, %v1056_v7  ;;  %v986_v11 = vmul.f32 %v1896_v15, %v947_v9 }
 0x16e   : > { %1104 = vst.msk [vmem:[%s1917_s7 + $0xe8] sm:$0xff] %vm319_vm0, %v1072_v8  ;;  %v1002_v12 = vmul.f32 %v1896_v15, %v963_v10  ;;  %v948_v13 = vld [vmem:[#allocation2 + $0x78] sm:$0xff] }
 0x16f   : > { %v964_v14 = vld [vmem:[#allocation2 + $0xf8] sm:$0xff]  ;;  %v1025_v16 = vadd.f32 %v1901_v25, %v986_v11  ;;  %v987_v18 = vmul.f32 %v1896_v15, %v948_v13 }
 0x170   : > { %v1041_v17 = vadd.f32 %v1901_v25, %v1002_v12  ;;  %v1003_v19 = vmul.f32 %v1896_v15, %v964_v14 }
 0x171   : > { %v1057_v20 = vmax.f32 %v1025_v16, 0.0  ;;  %v1026_v22 = vadd.f32 %v1901_v25, %v987_v18 }
 0x172   : > { %v1073_v21 = vmax.f32 %v1041_v17, 0.0  ;;  %v1042_v23 = vadd.f32 %v1901_v25, %v1003_v19 }
 0x173   : > { %1089 = vst.msk [vmem:[%s1917_s7 + $0x70] sm:$0xff] %vm319_vm0, %v1057_v20  ;;  %v1058_v24 = vmax.f32 %v1026_v22, 0.0 }
 0x174   : > { %1105 = vst.msk [vmem:[%s1917_s7 + $0xf0] sm:$0xff] %vm319_vm0, %v1073_v21  ;;  %v1074_v26 = vmax.f32 %v1042_v23, 0.0 }
 0x175   : > { %1090 = vst.msk [vmem:[%s1917_s7 + $0x78] sm:$0xff] %vm319_vm0, %v1058_v24 }
 0x176   : > { %1106 = vst.msk [vmem:[%s1917_s7 + $0xf8] sm:$0xff] %vm319_vm0, %v1074_v26 }
 0x177 PF: > { %s17_s20 = sadd.s32 1, %s1640_s20   ;;  %s2091_s15 = smov %s1624_s16 }
 0x178   : > { %p14_p9 = scmp.ge.s32.totalorder %s17_s20, 10   ;;  %s2092_s16 = smov %s1628_s17 }
 0x179   : > { %s2093_s17 = smov %s1720_s27  ;;  %s2094_s18 = smov %s1636_s19 }
 0x17a   : > { %s2095_s19 = smov %s2097_s22  ;;  %16 = sbr.rel (!%p14_p9) target bundleno = 4 (0x4), region = 93 }
 0x181   :  { %1135 = vsyncpa [#allocation4], 1 }
 0x182   :  { %1137 = vsyncpa [#allocation4 + $0x1], 1 }

</bundles_post_ra>
